<compile_context>
chip_gen: v7x
topology: tpu7x:2x2x1
jax: 0.10.0
libtpu: 0.0.40
codegen_flags: <defaults>
</compile_context>

<pallas_src>
import jax
import jax.numpy as jnp
from jax.experimental import pallas as pl
from jax.experimental.pallas import tpu as pltpu


def _round_up(x, m):
    return ((x + m - 1) // m) * m


def choose_fold(n, input_dim):
    """Largest lane-fold f with f * input_dim == 128 and f | n (else 1)."""
    if 0 < input_dim < 128 and 128 % input_dim == 0:
        f = 128 // input_dim
        if n % f == 0:
            return f
    return 1


def prepare_weight_mlp_params(w1, b1, w2, b2, w3, b3, fold=1):
    """One-time prep (hoist out of the hot path): transpose + fold-way block-diag.

    w1: (hidden, input_dim), w2: (hidden, hidden), w3: (input_dim, hidden).
    Returns (W1f, b1f, W2f, b2f, W3f, b3f) with
      W1f: (fold*in,  fold*hid), W2f: (fold*hid, fold*hid), W3f: (fold*hid, fold*in)
      b*f: (1, fold*dim), all float32.
    """
    eye = jnp.eye(fold, dtype=jnp.float32)
    w1f = jnp.kron(eye, jnp.asarray(w1, jnp.float32).T)
    w2f = jnp.kron(eye, jnp.asarray(w2, jnp.float32).T)
    w3f = jnp.kron(eye, jnp.asarray(w3, jnp.float32).T)
    b1f = jnp.tile(jnp.asarray(b1, jnp.float32), fold)[None, :]
    b2f = jnp.tile(jnp.asarray(b2, jnp.float32), fold)[None, :]
    b3f = jnp.tile(jnp.asarray(b3, jnp.float32), fold)[None, :]
    return w1f, b1f, w2f, b2f, w3f, b3f


def weight_mlp_kernel(x_ref, w1_ref, b1_ref, w2_ref, b2_ref, w3_ref, b3_ref, o_ref):
    # All math in f32 (correct on v5e which has no bf16 VPU/EUP). Three MXU matmuls
    # with f32 accumulation; bias+ReLU on VPU; sigmoid lowers to the EUP.
    h = jnp.dot(x_ref[...], w1_ref[...], preferred_element_type=jnp.float32)
    h = jnp.maximum(h + b1_ref[...], 0.0)
    h = jnp.dot(h, w2_ref[...], preferred_element_type=jnp.float32)
    h = jnp.maximum(h + b2_ref[...], 0.0)
    y = jnp.dot(h, w3_ref[...], preferred_element_type=jnp.float32)
    o_ref[...] = jax.nn.sigmoid(y + b3_ref[...]).astype(o_ref.dtype)


def weight_mlp_prepared(x, folded_params, *, fold=1, tile_n=8192, core_parallel=False):
    """x: (n, input_dim) float32, n % fold == 0; folded_params from prepare_weight_mlp_params.

    tile_n is the row-tile size in ORIGINAL rows (converted to folded rows internally).
    Set core_parallel=True on v7x to shard grid steps across both TensorCores.
    """
    w1f, b1f, w2f, b2f, w3f, b3f = folded_params
    n, input_dim = x.shape
    assert n % fold == 0, "n must be divisible by fold (use choose_fold)"
    d_f = fold * input_dim
    h_f = b1f.shape[1]
    assert w1f.shape == (d_f, h_f)
    assert w2f.shape == (h_f, h_f)
    assert w3f.shape == (h_f, d_f)

    n_rows = n // fold
    # Contiguous row-merge reshape: layout-preserving, no extra HBM pass.
    x_f = x.reshape(n_rows, d_f)

    # Large row tile (folded rows) to amortize per-grid-step overhead; multiple of 8
    # (f32 sublane). A tile covering everything uses the full-extent block (always legal).
    tile_rows = _round_up(max(8, tile_n // fold), 8)
    if tile_rows >= n_rows:
        tile_rows = n_rows
        grid = (1,)
    else:
        grid = (pl.cdiv(n_rows, tile_rows),)   # ragged last block masked by Pallas, no jnp.pad

    # VMEM budget (f32 bytes): x/out tiles double-buffered, weights+biases double-buffered
    # (block-invariant and tiny), activation temporaries single-buffered, plus slack.
    vmem_bytes = 4 * (
        2 * tile_rows * d_f                                   # x tile, double buffer
        + 2 * tile_rows * d_f                                 # out tile, double buffer
        + 2 * (d_f * h_f + h_f * h_f + h_f * d_f + 2 * h_f + d_f)  # weights + biases
        + 2 * tile_rows * h_f                                 # two f32 activation temps
    ) + (4 << 20)
    vmem_bytes = int(min(vmem_bytes, 48 << 20))               # under v7x's 64 MiB physical VMEM

    # Plain "parallel" vs "arbitrary" barely changes codegen; CORE_PARALLEL actually
    # shards the row axis across v7x's 2 TensorCores.
    semantics = (pltpu.CORE_PARALLEL,) if core_parallel else (pltpu.PARALLEL,)

    row_spec = pl.BlockSpec((tile_rows, d_f), lambda i: (i, 0))

    def const_spec(shape):
        return pl.BlockSpec(shape, lambda i: (0, 0))

    out = pl.pallas_call(
        weight_mlp_kernel,
        out_shape=jax.ShapeDtypeStruct((n_rows, d_f), jnp.float32),
        grid=grid,
        in_specs=[
            row_spec,                      # x (folded rows), tiled over the grid
            const_spec((d_f, h_f)),        # W1 block-diag, resident
            const_spec((1, h_f)),          # b1 tiled
            const_spec((h_f, h_f)),        # W2 block-diag
            const_spec((1, h_f)),          # b2
            const_spec((h_f, d_f)),        # W3 block-diag
            const_spec((1, d_f)),          # b3
        ],
        out_specs=pl.BlockSpec((tile_rows, d_f), lambda i: (i, 0)),
        compiler_params=pltpu.CompilerParams(
            dimension_semantics=semantics,
            vmem_limit_bytes=vmem_bytes,
        ),
    )(x_f, w1f, b1f, w2f, b2f, w3f, b3f)

    return out.reshape(n, input_dim)


def weight_mlp(x, w1, b1, w2, b2, w3, b3, *, tile_n=8192, core_parallel=False):
    """Convenience wrapper matching the PyTorch forward (handles the 1-D path).

    For hot loops, call prepare_weight_mlp_params once and use weight_mlp_prepared.
    """
    orig_ndim = x.ndim
    if orig_ndim == 1:                       # PyTorch forward's unsqueeze(0) path
        x = x[None, :]
    n, input_dim = x.shape
    fold = choose_fold(n, input_dim)
    folded = prepare_weight_mlp_params(w1, b1, w2, b2, w3, b3, fold=fold)
    out = weight_mlp_prepared(x, folded, fold=fold, tile_n=tile_n,
                              core_parallel=core_parallel)
    return out[0] if orig_ndim == 1 else out


def weight_mlp_ref(x, w1, b1, w2, b2, w3, b3):
    """Plain-JAX reference matching the PyTorch forward."""
    squeeze = x.ndim == 1
    if squeeze:
        x = x[None, :]
    h = jnp.maximum(x @ w1.T + b1, 0.0)
    h = jnp.maximum(h @ w2.T + b2, 0.0)
    y = jax.nn.sigmoid(h @ w3.T + b3)
    return y[0] if squeeze else y


def init_params(key, input_dim, hidden_dim):
    """PyTorch-Linear-style init: uniform(-1/sqrt(fan_in), 1/sqrt(fan_in))."""
    ks = jax.random.split(key, 6)
    b_in = 1.0 / jnp.sqrt(input_dim)
    b_hid = 1.0 / jnp.sqrt(hidden_dim)
    w1 = jax.random.uniform(ks[0], (hidden_dim, input_dim), jnp.float32, -b_in, b_in)
    b1 = jax.random.uniform(ks[1], (hidden_dim,), jnp.float32, -b_in, b_in)
    w2 = jax.random.uniform(ks[2], (hidden_dim, hidden_dim), jnp.float32, -b_hid, b_hid)
    b2 = jax.random.uniform(ks[3], (hidden_dim,), jnp.float32, -b_hid, b_hid)
    w3 = jax.random.uniform(ks[4], (input_dim, hidden_dim), jnp.float32, -b_hid, b_hid)
    b3 = jax.random.uniform(ks[5], (input_dim,), jnp.float32, -b_hid, b_hid)
    return w1, b1, w2, b2, w3, b3


if __name__ == "__main__":
    root = jax.random.PRNGKey(0)
    kx, kx2, kp = jax.random.split(root, 3)

    INPUT_DIM, HIDDEN = 32, 64               # WeightMLP default hidden_dim=64
    params = init_params(kp, INPUT_DIM, HIDDEN)

    # (1) Hot-path usage: one-time param prep (transpose + 4-way block-diag fold),
    #     then a jitted lane-dense (N/4, 128) kernel call.
    N = 64
    x = jax.random.normal(kx, (N, INPUT_DIM), jnp.float32)
    fold = choose_fold(N, INPUT_DIM)                          # 4 -> 128-lane I/O
    folded = prepare_weight_mlp_params(*params, fold=fold)    # hoisted off the hot path
    run = jax.jit(weight_mlp_prepared,
                  static_argnames=("fold", "tile_n", "core_parallel"))
    out = jax.block_until_ready(run(x, folded, fold=fold))
    ref = weight_mlp_ref(x, *params)
    assert out.shape == (N, INPUT_DIM)
    assert jnp.allclose(out, ref, atol=1e-5, rtol=1e-5)

    # (2) Multi-step grid with a ragged (masked) last block, no wrapper-side padding:
    #     200 rows / fold 4 = 50 folded rows, tile_rows=16 -> grid=(4,).
    N2 = 200
    x2 = jax.random.normal(kx2, (N2, INPUT_DIM), jnp.float32)
    fold2 = choose_fold(N2, INPUT_DIM)
    folded2 = prepare_weight_mlp_params(*params, fold=fold2)
    out2 = jax.block_until_ready(
        weight_mlp_prepared(x2, folded2, fold=fold2, tile_n=64))
    assert jnp.allclose(out2, weight_mlp_ref(x2, *params), atol=1e-5, rtol=1e-5)

    # (3) 1-D input path (PyTorch forward unsqueezes/squeezes); falls back to fold=1.
    x1 = x[0]
    out1 = jax.block_until_ready(weight_mlp(x1, *params))
    assert out1.shape == (INPUT_DIM,)
    assert jnp.allclose(out1, weight_mlp_ref(x1, *params), atol=1e-5, rtol=1e-5)

    print("KERNEL_OK")
</pallas_src>

<mosaic_0001>
module attributes {stable_mosaic.version = 11 : i64} {
  func.func @weight_mlp_kernel(%arg0: i32, %arg1: memref<16x128xf32, #tpu.memory_space<vmem>>, %arg2: memref<128x256xf32, #tpu.memory_space<vmem>>, %arg3: memref<1x256xf32, #tpu.memory_space<vmem>>, %arg4: memref<256x256xf32, #tpu.memory_space<vmem>>, %arg5: memref<1x256xf32, #tpu.memory_space<vmem>>, %arg6: memref<256x128xf32, #tpu.memory_space<vmem>>, %arg7: memref<1x128xf32, #tpu.memory_space<vmem>>, %arg8: memref<16x128xf32, #tpu.memory_space<vmem>>) attributes {dimension_semantics = [#tpu.dimension_semantics<parallel>], iteration_bounds = array<i64: 1>, scalar_prefetch = 0 : i64, scratch_operands = 0 : i64, tpu.core_type = #tpu.core_type<tc>, window_params = [{transform_indices = @transform_0, window_bounds = array<i64: 16, 128>}, {pipeline_mode = #tpu.pipeline_mode<synchronous>, transform_indices = @transform_1, window_bounds = array<i64: 128, 256>}, {pipeline_mode = #tpu.pipeline_mode<synchronous>, transform_indices = @transform_2, window_bounds = array<i64: 1, 256>}, {pipeline_mode = #tpu.pipeline_mode<synchronous>, transform_indices = @transform_3, window_bounds = array<i64: 256, 256>}, {pipeline_mode = #tpu.pipeline_mode<synchronous>, transform_indices = @transform_4, window_bounds = array<i64: 1, 256>}, {pipeline_mode = #tpu.pipeline_mode<synchronous>, transform_indices = @transform_5, window_bounds = array<i64: 256, 128>}, {pipeline_mode = #tpu.pipeline_mode<synchronous>, transform_indices = @transform_6, window_bounds = array<i64: 1, 128>}, {transform_indices = @transform_7, window_bounds = array<i64: 16, 128>}]} {
    %c0 = arith.constant 0 : index
    %c0_0 = arith.constant 0 : index
    %0 = vector.load %arg1[%c0, %c0_0] : memref<16x128xf32, #tpu.memory_space<vmem>>, vector<16x128xf32>
    %c0_1 = arith.constant 0 : index
    %c0_2 = arith.constant 0 : index
    %1 = vector.load %arg2[%c0_1, %c0_2] : memref<128x256xf32, #tpu.memory_space<vmem>>, vector<128x256xf32>
    %cst = arith.constant dense<0.000000e+00> : vector<16x256xf32>
    %2 = tpu.matmul %0, %1, %cst {dimension_numbers = #tpu.dot_dimension_numbers<[1], [0], [0], [1], [0, 0, 1, 1], [], []>} : vector<16x128xf32>, vector<128x256xf32>, vector<16x256xf32> -> vector<16x256xf32>
    %c0_3 = arith.constant 0 : index
    %c0_4 = arith.constant 0 : index
    %3 = vector.load %arg3[%c0_3, %c0_4] : memref<1x256xf32, #tpu.memory_space<vmem>>, vector<1x256xf32>
    %4 = vector.broadcast %3 : vector<1x256xf32> to vector<16x256xf32>
    %5 = arith.addf %2, %4 : vector<16x256xf32>
    %cst_5 = arith.constant 0.000000e+00 : f32
    %6 = vector.broadcast %cst_5 : f32 to vector<16x256xf32>
    %7 = arith.maximumf %5, %6 : vector<16x256xf32>
    %c0_6 = arith.constant 0 : index
    %c0_7 = arith.constant 0 : index
    %8 = vector.load %arg4[%c0_6, %c0_7] : memref<256x256xf32, #tpu.memory_space<vmem>>, vector<256x256xf32>
    %cst_8 = arith.constant dense<0.000000e+00> : vector<16x256xf32>
    %9 = tpu.matmul %7, %8, %cst_8 {dimension_numbers = #tpu.dot_dimension_numbers<[1], [0], [0], [1], [0, 0, 1, 1], [], []>} : vector<16x256xf32>, vector<256x256xf32>, vector<16x256xf32> -> vector<16x256xf32>
    %c0_9 = arith.constant 0 : index
    %c0_10 = arith.constant 0 : index
    %10 = vector.load %arg5[%c0_9, %c0_10] : memref<1x256xf32, #tpu.memory_space<vmem>>, vector<1x256xf32>
    %11 = vector.broadcast %10 : vector<1x256xf32> to vector<16x256xf32>
    %12 = arith.addf %9, %11 : vector<16x256xf32>
    %cst_11 = arith.constant 0.000000e+00 : f32
    %13 = vector.broadcast %cst_11 : f32 to vector<16x256xf32>
    %14 = arith.maximumf %12, %13 : vector<16x256xf32>
    %c0_12 = arith.constant 0 : index
    %c0_13 = arith.constant 0 : index
    %15 = vector.load %arg6[%c0_12, %c0_13] : memref<256x128xf32, #tpu.memory_space<vmem>>, vector<256x128xf32>
    %cst_14 = arith.constant dense<0.000000e+00> : vector<16x128xf32>
    %16 = tpu.matmul %14, %15, %cst_14 {dimension_numbers = #tpu.dot_dimension_numbers<[1], [0], [0], [1], [0, 0, 1, 1], [], []>} : vector<16x256xf32>, vector<256x128xf32>, vector<16x128xf32> -> vector<16x128xf32>
    %c0_15 = arith.constant 0 : index
    %c0_16 = arith.constant 0 : index
    %17 = vector.load %arg7[%c0_15, %c0_16] : memref<1x128xf32, #tpu.memory_space<vmem>>, vector<1x128xf32>
    %18 = vector.broadcast %17 : vector<1x128xf32> to vector<16x128xf32>
    %19 = arith.addf %16, %18 : vector<16x128xf32>
    %20 = arith.negf %19 : vector<16x128xf32>
    %21 = math.exp %20 : vector<16x128xf32>
    %cst_17 = arith.constant 1.000000e+00 : f32
    %22 = vector.broadcast %cst_17 : f32 to vector<16x128xf32>
    %23 = arith.addf %22, %21 : vector<16x128xf32>
    %24 = arith.divf %22, %23 : vector<16x128xf32>
    %c0_18 = arith.constant 0 : index
    %c0_19 = arith.constant 0 : index
    %25 = vector.load %arg8[%c0_18, %c0_19] : memref<16x128xf32, #tpu.memory_space<vmem>>, vector<16x128xf32>
    tpu.vector_store %arg8[%c0_18, %c0_19], %24 {strides = array<i32>} : memref<16x128xf32, #tpu.memory_space<vmem>>, vector<16x128xf32>,
    return
  }
  func.func @transform_0(%arg0: i32) -> (i32, i32) {
    %c0_i32 = arith.constant 0 : i32
    %c0_i32_0 = arith.constant 0 : i32
    return %arg0, %c0_i32 : i32, i32
  }
  func.func @transform_1(%arg0: i32) -> (i32, i32) {
    %c0_i32 = arith.constant 0 : i32
    %c0_i32_0 = arith.constant 0 : i32
    %c0_i32_1 = arith.constant 0 : i32
    return %c0_i32, %c0_i32_0 : i32, i32
  }
  func.func @transform_2(%arg0: i32) -> (i32, i32) {
    %c0_i32 = arith.constant 0 : i32
    %c0_i32_0 = arith.constant 0 : i32
    %c0_i32_1 = arith.constant 0 : i32
    return %c0_i32, %c0_i32_0 : i32, i32
  }
  func.func @transform_3(%arg0: i32) -> (i32, i32) {
    %c0_i32 = arith.constant 0 : i32
    %c0_i32_0 = arith.constant 0 : i32
    %c0_i32_1 = arith.constant 0 : i32
    return %c0_i32, %c0_i32_0 : i32, i32
  }
  func.func @transform_4(%arg0: i32) -> (i32, i32) {
    %c0_i32 = arith.constant 0 : i32
    %c0_i32_0 = arith.constant 0 : i32
    %c0_i32_1 = arith.constant 0 : i32
    return %c0_i32, %c0_i32_0 : i32, i32
  }
  func.func @transform_5(%arg0: i32) -> (i32, i32) {
    %c0_i32 = arith.constant 0 : i32
    %c0_i32_0 = arith.constant 0 : i32
    %c0_i32_1 = arith.constant 0 : i32
    return %c0_i32, %c0_i32_0 : i32, i32
  }
  func.func @transform_6(%arg0: i32) -> (i32, i32) {
    %c0_i32 = arith.constant 0 : i32
    %c0_i32_0 = arith.constant 0 : i32
    %c0_i32_1 = arith.constant 0 : i32
    return %c0_i32, %c0_i32_0 : i32, i32
  }
  func.func @transform_7(%arg0: i32) -> (i32, i32) {
    %c0_i32 = arith.constant 0 : i32
    %c0_i32_0 = arith.constant 0 : i32
    return %arg0, %c0_i32 : i32, i32
  }
}

</mosaic_0001>

<bundles_post_ra>
// kernel: weight_mlp_prepared.1
= control target key start
LH: loop header
LB: loop body
LE: loop exit
PB: predicated region body
PF: predicated region fallthrough
CT: control target
= control target key end

     0   :  { %12 = vsyncpa [#allocation3], 0  ;;  %s854_s0 = inlined_call_operand.vmem [shape: f32[16,128], index: 0, kind: input, shape index: {}]   ;;  %s855_s1 = inlined_call_operand.hbm [shape: f32[128,256], index: 1, kind: input, shape index: {}]   ;;  %s856_s2 = inlined_call_operand.vmem [shape: f32[1,256], index: 2, kind: input, shape index: {}]   ;;  %s857_s3 = inlined_call_operand.hbm [shape: f32[256,256], index: 3, kind: input, shape index: {}]   ;;  %s858_s4 = inlined_call_operand.vmem [shape: f32[1,256], index: 4, kind: input, shape index: {}]   ;;  %s859_s5 = inlined_call_operand.hbm [shape: f32[256,128], index: 5, kind: input, shape index: {}]   ;;  %s860_s6 = inlined_call_operand.vmem [shape: f32[1,128], index: 6, kind: input, shape index: {}]   ;;  %s861_s7 = inlined_call_operand.vmem [shape: f32[16,128], index: 7, kind: output, shape index: {}]  }
   0x1   :  { %13 = vsyncpa [#allocation5], 0  ;;  %s740_s24 = smov [#allocation4]   ;;  %s741_s26 = smov [#allocation2]  }
   0x2   :  { %s35_s25 = sshll.u32 %s740_s24, 4  ;;  %s21_s27 = sshll.u32 %s741_s26, 4  ;;  %s36_s25 = int_to_ptr.vmem [resolvable:$true] %s35_s25  ;;  %s788_s27 = int_to_ptr.vmem [resolvable:$true] %s21_s27 }
   0x3   :  { %s670_s30 = scalar_lea.hbm %s857_s3, 8192 }
   0x4   :  { %p671_p0 = scmp.ne.s32.totalorder %s857_s3, %s670_s30  ;;  %p674_p1 = scmp.lt.u32.totalorder %s670_s30, %s857_s3 }
   0x6   :  { %p676_p2 = pnand %p674_p1, %p671_p0 }
   0x8   :  { %679 = shalt.err (!%p676_p2)
}
   0x9   :  { %s680_s12 = scalar_lea.vmem %s36_s25, 8192  ;;  %p685_p4 = scmp.lt.s32.totalorder %s36_s25, %s36_s25 }
   0xa   :  { %p681_p3 = scmp.ne.s32.totalorder %s36_s25, %s680_s12  ;;  %p686_p5 = scmp.lt.s32.totalorder %s680_s12, %s680_s12 }
   0xc   :  { %p687_p6 = por %p686_p5, %p685_p4 }
   0xe   :  { %p688_p7 = pnand %p687_p6, %p681_p3 }
  0x10   :  { %691 = shalt.err (!%p688_p7)
}
  0x11   :  { %s742_s13 = smov 256   ;;  %s743_s14 = smov 16  }
  0x12   :  { %41 = dma.hbm_to_vmem [thread:$0]  %s857_s3, 8192, %s36_s25, [#allocation5], %s742_s13, %s742_s13, %s743_s14  }
  0x13   :  { %s692_s19 = scalar_lea.hbm %s855_s1, 4096 }
  0x14   :  { %p693_p8 = scmp.ne.s32.totalorder %s855_s1, %s692_s19  ;;  %p696_p9 = scmp.lt.u32.totalorder %s692_s19, %s855_s1 }
  0x16   :  { %p698_p10 = pnand %p696_p9, %p693_p8 }
  0x18   :  { %701 = shalt.err (!%p698_p10)
}
  0x19   :  { %s702_s24 = scalar_lea.vmem %s788_s27, 4096  ;;  %p707_p12 = scmp.lt.s32.totalorder %s788_s27, %s788_s27 }
  0x1a   :  { %p703_p11 = scmp.ne.s32.totalorder %s788_s27, %s702_s24  ;;  %p708_p13 = scmp.lt.s32.totalorder %s702_s24, %s702_s24 }
  0x1c   :  { %p709_p0 = por %p708_p13, %p707_p12 }
  0x1e   :  { %p710_p1 = pnand %p709_p0, %p703_p11 }
  0x20   :  { %713 = shalt.err (!%p710_p1)
}
  0x21   :  { %27 = dma.hbm_to_vmem [thread:$0]  %s855_s1, 4096, %s788_s27, [#allocation3], %s742_s13, %s742_s13, %s743_s14  }
  0x22   :  { %s744_s26 = smov [#allocation6]   ;;  %s714_s8 = scalar_lea.hbm %s859_s5, 4096 }
  0x23   :  { %s49_s28 = sshll.u32 %s744_s26, 4  ;;  %p715_p2 = scmp.ne.s32.totalorder %s859_s5, %s714_s8  ;;  %s50_s28 = int_to_ptr.vmem [resolvable:$true] %s49_s28 }
  0x24   :  { %p718_p3 = scmp.lt.u32.totalorder %s714_s8, %s859_s5 }
  0x26   :  { %p720_p4 = pnand %p718_p3, %p715_p2 }
  0x28   :  { %723 = shalt.err (!%p720_p4)
}
  0x29   :  { %s724_s15 = scalar_lea.vmem %s50_s28, 4096  ;;  %p729_p6 = scmp.lt.s32.totalorder %s50_s28, %s50_s28 }
  0x2a   :  { %p725_p5 = scmp.ne.s32.totalorder %s50_s28, %s724_s15  ;;  %p730_p7 = scmp.lt.s32.totalorder %s724_s15, %s724_s15 }
  0x2c   :  { %p731_p8 = por %p730_p7, %p729_p6 }
  0x2e   :  { %p732_p9 = pnand %p731_p8, %p725_p5 }
  0x30   :  { %735 = shalt.err (!%p732_p9)
}
  0x31   :  { %s745_s1 = smov 128   ;;  %s746_s27 = smov 8  }
  0x32   :  { %55 = dma.hbm_to_vmem [thread:$0]  %s859_s5, 4096, %s50_s28, [#allocation5], %s745_s1, %s745_s1, %s746_s27  }
  0x33   :  { %736 = dma.done.wait [#allocation3], 4096  }
  0x34   :  { %737 = vsyncadd [#allocation3], 4294963200 }
  0x35   :  { %738 = dma.done.wait [#allocation5], 12288  }
  0x36   :  { %739 = vsyncadd [#allocation5], 4294955008  ;;  %v747_v0 = vmov 0.0   ;;  %v70_v1 = vld [vmem:[#allocation2 + $0x8] sm:$0xff]  ;;  %v72_v2 = vld [vmem:[#allocation2 + $0x18] sm:$0xff] }
  0x37   :  { %177 = vmatprep.mubr.f32.mxu0 %v747_v0  ;;  %v69_v3 = vld [vmem:[#allocation2] sm:$0xff]  ;;  %v526_v4 = vpack.c.bf16 %v72_v2, %v70_v1  ;;  %v71_v5 = vld [vmem:[#allocation2 + $0x10] sm:$0xff]  ;;  %v74_v6 = vld [vmem:[#allocation2 + $0x28] sm:$0xff] }
  0x38   :  { %v76_v7 = vld [vmem:[#allocation2 + $0x38] sm:$0xff]  ;;  %v528_v8 = vpack.c.bf16 %v71_v5, %v69_v3  ;;  %v73_v10 = vld [vmem:[#allocation2 + $0x20] sm:$0xff]  ;;  %v75_v11 = vld [vmem:[#allocation2 + $0x30] sm:$0xff] }
  0x39   :  { %v530_v9 = vpack.c.bf16 %v76_v7, %v74_v6  ;;  %v78_v12 = vld [vmem:[#allocation2 + $0x48] sm:$0xff]  ;;  %527 = vmatprep.subr.bf16.mxu0 %v526_v4  ;;  %v80_v13 = vld [vmem:[#allocation2 + $0x58] sm:$0xff]  ;;  %v532_v14 = vpack.c.bf16 %v75_v11, %v73_v10  ;;  %v77_v16 = vld [vmem:[#allocation2 + $0x40] sm:$0xff] }
  0x3a   :  { %529 = vmatpush1.bf16.msra.mxu0 %v528_v8  ;;  %v534_v15 = vpack.c.bf16 %v80_v13, %v78_v12  ;;  %v79_v17 = vld [vmem:[#allocation2 + $0x50] sm:$0xff]  ;;  %v82_v18 = vld [vmem:[#allocation2 + $0x68] sm:$0xff]  ;;  %v84_v19 = vld [vmem:[#allocation2 + $0x78] sm:$0xff] }
  0x3b   :  { %531 = vmatprep.subr.bf16.mxu0 %v530_v9  ;;  %v536_v20 = vpack.c.bf16 %v79_v17, %v77_v16  ;;  %v538_v21 = vpack.c.bf16 %v84_v19, %v82_v18  ;;  %v81_v22 = vld [vmem:[#allocation2 + $0x60] sm:$0xff]  ;;  %v83_v23 = vld [vmem:[#allocation2 + $0x70] sm:$0xff]  ;;  %v86_v24 = vld [vmem:[#allocation2 + $0x88] sm:$0xff] }
  0x3c   :  { %v88_v25 = vld [vmem:[#allocation2 + $0x98] sm:$0xff]  ;;  %v85_v26 = vld [vmem:[#allocation2 + $0x80] sm:$0xff]  ;;  %v87_v27 = vld [vmem:[#allocation2 + $0x90] sm:$0xff]  ;;  %v540_v30 = vpack.c.bf16 %v83_v23, %v81_v22 }
  0x3d   :  { %v195_v28 = vld [vmem:[#allocation4 + $0x8] sm:$0xff]  ;;  %v197_v29 = vld [vmem:[#allocation4 + $0x18] sm:$0xff]  ;;  %v194_v33 = vld [vmem:[#allocation4] sm:$0xff]  ;;  %v542_v36 = vpack.c.bf16 %v88_v25, %v86_v24  ;;  %v544_v46 = vpack.c.bf16 %v87_v27, %v85_v26 }
  0x3e   :  { %533 = vmatpush1.bf16.msra.mxu0 %v532_v14  ;;  %v90_v31 = vld [vmem:[#allocation2 + $0xa8] sm:$0xff]  ;;  %v558_v32 = vpack.c.bf16 %v197_v29, %v195_v28  ;;  %v196_v34 = vld [vmem:[#allocation4 + $0x10] sm:$0xff]  ;;  %v201_v38 = vld [vmem:[#allocation4 + $0x38] sm:$0xff] }
  0x3f   :  { %535 = vmatprep.subr.bf16.mxu0 %v534_v15  ;;  %v199_v35 = vld [vmem:[#allocation4 + $0x28] sm:$0xff]  ;;  %v560_v37 = vpack.c.bf16 %v196_v34, %v194_v33  ;;  %v198_v39 = vld [vmem:[#allocation4 + $0x20] sm:$0xff]  ;;  %v200_v40 = vld [vmem:[#allocation4 + $0x30] sm:$0xff] }
  0x40   :  { %v92_v41 = vld [vmem:[#allocation2 + $0xb8] sm:$0xff]  ;;  %559 = vmatprep.subr.bf16.mxu1 %v558_v32  ;;  %v562_v42 = vpack.c.bf16 %v201_v38, %v199_v35  ;;  %v203_v43 = vld [vmem:[#allocation4 + $0x48] sm:$0xff]  ;;  %v564_v45 = vpack.c.bf16 %v200_v40, %v198_v39  ;;  %v89_v47 = vld [vmem:[#allocation2 + $0xa0] sm:$0xff] }
  0x41   :  { %v205_v44 = vld [vmem:[#allocation4 + $0x58] sm:$0xff]  ;;  %561 = vmatpush1.bf16.msra.mxu1 %v560_v37  ;;  %v202_v49 = vld [vmem:[#allocation4 + $0x40] sm:$0xff]  ;;  %v204_v50 = vld [vmem:[#allocation4 + $0x50] sm:$0xff]  ;;  %v546_v51 = vpack.c.bf16 %v92_v41, %v90_v31 }
  0x42   :  { %537 = vmatpush1.bf16.msra.mxu0 %v536_v20  ;;  %563 = vmatprep.subr.bf16.mxu1 %v562_v42  ;;  %v566_v48 = vpack.c.bf16 %v205_v44, %v203_v43  ;;  %v91_v52 = vld [vmem:[#allocation2 + $0xb0] sm:$0xff]  ;;  %v207_v53 = vld [vmem:[#allocation4 + $0x68] sm:$0xff]  ;;  %v209_v54 = vld [vmem:[#allocation4 + $0x78] sm:$0xff]  ;;  %v568_v57 = vpack.c.bf16 %v204_v50, %v202_v49 }
  0x43   :  { %539 = vmatprep.subr.bf16.mxu0 %v538_v21  ;;  %v94_v55 = vld [vmem:[#allocation2 + $0xc8] sm:$0xff]  ;;  %v96_v56 = vld [vmem:[#allocation2 + $0xd8] sm:$0xff]  ;;  %v548_v58 = vpack.c.bf16 %v91_v52, %v89_v47  ;;  %v93_v59 = vld [vmem:[#allocation2 + $0xc0] sm:$0xff]  ;;  %v570_v60 = vpack.c.bf16 %v209_v54, %v207_v53 }
  0x44   :  { %v206_v61 = vld [vmem:[#allocation4 + $0x60] sm:$0xff]  ;;  %v208_v62 = vld [vmem:[#allocation4 + $0x70] sm:$0xff]  ;;  %v550_v63 = vpack.c.bf16 %v96_v56, %v94_v55  ;;  %v211_v2 = vld [vmem:[#allocation4 + $0x88] sm:$0xff] }
  0x45   :  { %565 = vmatpush1.bf16.msra.mxu1 %v564_v45  ;;  %v95_v1 = vld [vmem:[#allocation2 + $0xd0] sm:$0xff]  ;;  %v213_v3 = vld [vmem:[#allocation4 + $0x98] sm:$0xff]  ;;  %v98_v4 = vld [vmem:[#allocation2 + $0xe8] sm:$0xff]  ;;  %v572_v6 = vpack.c.bf16 %v208_v62, %v206_v61 }
  0x46   :  { %541 = vmatpush1.bf16.msra.mxu0 %v540_v30  ;;  %567 = vmatprep.subr.bf16.mxu1 %v566_v48  ;;  %v100_v5 = vld [vmem:[#allocation2 + $0xf8] sm:$0xff]  ;;  %v552_v7 = vpack.c.bf16 %v95_v1, %v93_v59  ;;  %v97_v8 = vld [vmem:[#allocation2 + $0xe0] sm:$0xff]  ;;  %v574_v9 = vpack.c.bf16 %v213_v3, %v211_v2  ;;  %v212_v11 = vld [vmem:[#allocation4 + $0x90] sm:$0xff] }
  0x47   :  { %543 = vmatprep.subr.bf16.mxu0 %v542_v36  ;;  %v210_v10 = vld [vmem:[#allocation4 + $0x80] sm:$0xff]  ;;  %v554_v12 = vpack.c.bf16 %v100_v5, %v98_v4  ;;  %v99_v13 = vld [vmem:[#allocation2 + $0xf0] sm:$0xff]  ;;  %v215_v14 = vld [vmem:[#allocation4 + $0xa8] sm:$0xff] }
  0x48   :  { %v217_v15 = vld [vmem:[#allocation4 + $0xb8] sm:$0xff]  ;;  %v576_v16 = vpack.c.bf16 %v212_v11, %v210_v10  ;;  %v556_v17 = vpack.c.bf16 %v99_v13, %v97_v8  ;;  %v214_v19 = vld [vmem:[#allocation4 + $0xa0] sm:$0xff]  ;;  %v216_v20 = vld [vmem:[#allocation4 + $0xb0] sm:$0xff] }
  0x49   :  { %569 = vmatpush1.bf16.msra.mxu1 %v568_v57  ;;  %v578_v18 = vpack.c.bf16 %v217_v15, %v215_v14  ;;  %v219_v21 = vld [vmem:[#allocation4 + $0xc8] sm:$0xff]  ;;  %v221_v22 = vld [vmem:[#allocation4 + $0xd8] sm:$0xff]  ;;  %v580_v23 = vpack.c.bf16 %v216_v20, %v214_v19  ;;  %v67_v24 = vld [vmem:[%s854_s0] sm:$0xff] }
  0x4a   :  { %545 = vmatpush1.bf16.msra.mxu0 %v544_v46  ;;  %571 = vmatprep.subr.bf16.mxu1 %v570_v60  ;;  %v582_v25 = vpack.c.bf16 %v221_v22, %v219_v21  ;;  %v218_v26 = vld [vmem:[#allocation4 + $0xc0] sm:$0xff]  ;;  %v220_v27 = vld [vmem:[#allocation4 + $0xd0] sm:$0xff]  ;;  %v223_v28 = vld [vmem:[#allocation4 + $0xe8] sm:$0xff] }
  0x4b   :  { %547 = vmatprep.subr.bf16.mxu0 %v546_v51  ;;  %v225_v29 = vld [vmem:[#allocation4 + $0xf8] sm:$0xff]  ;;  %v584_v30 = vpack.c.bf16 %v220_v27, %v218_v26  ;;  %v68_v31 = vld [vmem:[%s854_s0 + $0x8] sm:$0xff]  ;;  %v222_v33 = vld [vmem:[#allocation4 + $0xe0] sm:$0xff] }
  0x4c   :  { %v586_v32 = vpack.c.bf16 %v225_v29, %v223_v28  ;;  %v224_v34 = vld [vmem:[#allocation4 + $0xf0] sm:$0xff]  ;;  %v227_v35 = vld [vmem:[#allocation4 + $0x108] sm:$0xff]  ;;  %v229_v36 = vld [vmem:[#allocation4 + $0x118] sm:$0xff] }
  0x4d   :  { %573 = vmatpush1.bf16.msra.mxu1 %v572_v6  ;;  %v588_v37 = vpack.c.bf16 %v224_v34, %v222_v33  ;;  %v590_v38 = vpack.c.bf16 %v229_v36, %v227_v35  ;;  %v226_v39 = vld [vmem:[#allocation4 + $0x100] sm:$0xff]  ;;  %v228_v40 = vld [vmem:[#allocation4 + $0x110] sm:$0xff]  ;;  %v231_v41 = vld [vmem:[#allocation4 + $0x128] sm:$0xff] }
  0x4e   :  { %549 = vmatpush1.bf16.msra.mxu0 %v548_v58  ;;  %575 = vmatprep.subr.bf16.mxu1 %v574_v9  ;;  %v233_v42 = vld [vmem:[#allocation4 + $0x138] sm:$0xff]  ;;  %v230_v44 = vld [vmem:[#allocation4 + $0x120] sm:$0xff]  ;;  %v232_v45 = vld [vmem:[#allocation4 + $0x130] sm:$0xff] }
  0x4f   :  { %551 = vmatprep.subr.bf16.mxu0 %v550_v63  ;;  %v594_v43 = vpack.c.bf16 %v233_v42, %v231_v41  ;;  %v235_v46 = vld [vmem:[#allocation4 + $0x148] sm:$0xff]  ;;  %v237_v47 = vld [vmem:[#allocation4 + $0x158] sm:$0xff]  ;;  %v596_v48 = vpack.c.bf16 %v232_v45, %v230_v44  ;;  %v234_v50 = vld [vmem:[#allocation4 + $0x140] sm:$0xff] }
  0x50   :  { %v598_v49 = vpack.c.bf16 %v237_v47, %v235_v46  ;;  %v236_v51 = vld [vmem:[#allocation4 + $0x150] sm:$0xff]  ;;  %v239_v52 = vld [vmem:[#allocation4 + $0x168] sm:$0xff]  ;;  %v241_v53 = vld [vmem:[#allocation4 + $0x178] sm:$0xff] }
  0x51   :  { %577 = vmatpush1.bf16.msra.mxu1 %v576_v16  ;;  %v600_v54 = vpack.c.bf16 %v236_v51, %v234_v50  ;;  %v602_v55 = vpack.c.bf16 %v241_v53, %v239_v52  ;;  %v238_v56 = vld [vmem:[#allocation4 + $0x160] sm:$0xff]  ;;  %v240_v57 = vld [vmem:[#allocation4 + $0x170] sm:$0xff]  ;;  %v243_v58 = vld [vmem:[#allocation4 + $0x188] sm:$0xff] }
  0x52   :  { %553 = vmatpush1.bf16.msra.mxu0 %v552_v7  ;;  %579 = vmatprep.subr.bf16.mxu1 %v578_v18  ;;  %v245_v59 = vld [vmem:[#allocation4 + $0x198] sm:$0xff]  ;;  %v604_v60 = vpack.c.bf16 %v240_v57, %v238_v56  ;;  %v242_v62 = vld [vmem:[#allocation4 + $0x180] sm:$0xff]  ;;  %v244_v63 = vld [vmem:[#allocation4 + $0x190] sm:$0xff] }
  0x53   :  { %555 = vmatprep.subr.bf16.mxu0 %v554_v12  ;;  %v606_v61 = vpack.c.bf16 %v245_v59, %v243_v58  ;;  %v247_v1 = vld [vmem:[#allocation4 + $0x1a8] sm:$0xff]  ;;  %v249_v2 = vld [vmem:[#allocation4 + $0x1b8] sm:$0xff]  ;;  %v608_v3 = vpack.c.bf16 %v244_v63, %v242_v62  ;;  %v246_v5 = vld [vmem:[#allocation4 + $0x1a0] sm:$0xff]  ;;  %v103_v58 = vlaneseq }
  0x54   :  { %v610_v4 = vpack.c.bf16 %v249_v2, %v247_v1  ;;  %v248_v6 = vld [vmem:[#allocation4 + $0x1b0] sm:$0xff]  ;;  %v251_v7 = vld [vmem:[#allocation4 + $0x1c8] sm:$0xff]  ;;  %v253_v8 = vld [vmem:[#allocation4 + $0x1d8] sm:$0xff] }
  0x55   :  { %581 = vmatpush1.bf16.msra.mxu1 %v580_v23  ;;  %v612_v9 = vpack.c.bf16 %v248_v6, %v246_v5  ;;  %v614_v10 = vpack.c.bf16 %v253_v8, %v251_v7  ;;  %v250_v11 = vld [vmem:[#allocation4 + $0x1c0] sm:$0xff]  ;;  %v252_v12 = vld [vmem:[#allocation4 + $0x1d0] sm:$0xff]  ;;  %v255_v14 = vld [vmem:[#allocation4 + $0x1e8] sm:$0xff]  ;;  %v104_v59 = vshrl.u32 %v103_v58, 7 }
  0x56   :  { %557 = vmatpush1.bf16.msra.mxu0 %v556_v17  ;;  %583 = vmatprep.subr.bf16.mxu1 %v582_v25  ;;  %v616_v13 = vpack.c.bf16 %v252_v12, %v250_v11  ;;  %v257_v15 = vld [vmem:[#allocation4 + $0x1f8] sm:$0xff]  ;;  %v254_v17 = vld [vmem:[#allocation4 + $0x1e0] sm:$0xff]  ;;  %v256_v18 = vld [vmem:[#allocation4 + $0x1f0] sm:$0xff] }
  0x57   :  { %v618_v16 = vpack.c.bf16 %v257_v15, %v255_v14  ;;  %v620_v19 = vpack.c.bf16 %v256_v18, %v254_v17  ;;  %v367_v20 = vld [vmem:[#allocation6 + $0x80] sm:$0xff]  ;;  %v368_v21 = vld [vmem:[#allocation6 + $0x88] sm:$0xff]  ;;  %v369_v25 = vld [vmem:[#allocation6 + $0x90] sm:$0xff]  ;;  %v109_v62 = vsub.s32 1, %v104_v59 }
  0x58   :  { %v351_v22 = vld [vmem:[#allocation6] sm:$0xff]  ;;  %v622_v23 = vpack.c.bf16 %v368_v21, %v367_v20  ;;  %v370_v26 = vld [vmem:[#allocation6 + $0x98] sm:$0xff]  ;;  %v353_v29 = vld [vmem:[#allocation6 + $0x10] sm:$0xff] }
  0x59   :  { %178 = vmatmul.mubr.f32.vlgmr.msra.gmra.mrb[0].mxu0 %v67_v24  ;;  %585 = vmatpush1.bf16.msra.mxu1 %v584_v30  ;;  %v352_v24 = vld [vmem:[#allocation6 + $0x8] sm:$0xff]  ;;  %v626_v28 = vpack.c.bf16 %v370_v26, %v369_v25  ;;  %v354_v30 = vld [vmem:[#allocation6 + $0x18] sm:$0xff]  ;;  %v355_v35 = vld [vmem:[#allocation6 + $0x20] sm:$0xff] }
  0x5a   :  { %183 = vmatprep.mubr.f32.mxu0 %v747_v0  ;;  %587 = vmatprep.subr.bf16.mxu1 %v586_v32  ;;  %v592_v0 = vpack.c.bf16 %v228_v40, %v226_v39  ;;  %v624_v27 = vpack.c.bf16 %v352_v24, %v351_v22  ;;  %v372_v32 = vld [vmem:[#allocation6 + $0xa8] sm:$0xff]  ;;  %v628_v33 = vpack.c.bf16 %v354_v30, %v353_v29  ;;  %v357_v41 = vld [vmem:[#allocation6 + $0x30] sm:$0xff]  ;;  %v358_v42 = vld [vmem:[#allocation6 + $0x38] sm:$0xff] }
  0x5b   :  { %623 = vmatprep.subr.bf16.mxu0 %v622_v23  ;;  %v356_v36 = vld [vmem:[#allocation6 + $0x28] sm:$0xff]  ;;  %v636_v44 = vpack.c.bf16 %v358_v42, %v357_v41  ;;  %v359_v46 = vld [vmem:[#allocation6 + $0x40] sm:$0xff]  ;;  %v361_v52 = vld [vmem:[#allocation6 + $0x50] sm:$0xff] }
  0x5c   :  { %625 = vmatpush3.bf16.msra.mxu0 %v624_v27  ;;  %v632_v39 = vpack.c.bf16 %v356_v36, %v355_v35  ;;  %v360_v47 = vld [vmem:[#allocation6 + $0x48] sm:$0xff]  ;;  %v362_v53 = vld [vmem:[#allocation6 + $0x58] sm:$0xff]  ;;  %v363_v14 = vld [vmem:[#allocation6 + $0x60] sm:$0xff] }
  0x5d   :  { %184 = vmatmul.mubr.f32.gmra.mrb[2].mxu0 %v68_v31  ;;  %589 = vmatpush1.bf16.msra.mxu1 %v588_v37  ;;  %v371_v31 = vld [vmem:[#allocation6 + $0xa0] sm:$0xff]  ;;  %v373_v37 = vld [vmem:[#allocation6 + $0xb0] sm:$0xff]  ;;  %v640_v50 = vpack.c.bf16 %v360_v47, %v359_v46  ;;  %v644_v56 = vpack.c.bf16 %v362_v53, %v361_v52  ;;  %v364_v15 = vld [vmem:[#allocation6 + $0x68] sm:$0xff] }
  0x5e   :  { %591 = vmatprep.subr.bf16.mxu1 %v590_v38  ;;  %627 = vmatprep.subr.bf16.mxu0 %v626_v28  ;;  %v630_v34 = vpack.c.bf16 %v372_v32, %v371_v31  ;;  %v374_v38 = vld [vmem:[#allocation6 + $0xb8] sm:$0xff]  ;;  %v381_v17 = vld [vmem:[#allocation6 + $0xf0] sm:$0xff]  ;;  %v258_v23 = vld [vmem:[%s858_s4] sm:$0x3] }
  0x5f   :  { %v634_v40 = vpack.c.bf16 %v374_v38, %v373_v37  ;;  %v382_v18 = vld [vmem:[#allocation6 + $0xf8] sm:$0xff]  ;;  %v365_v20 = vld [vmem:[#allocation6 + $0x70] sm:$0xff]  ;;  %v267_v25 = vrot.slane %v258_v23, %v109_v62 }
  0x60   :  { %629 = vmatpush3.bf16.msra.mxu0 %v628_v33  ;;  %v366_v21 = vld [vmem:[#allocation6 + $0x78] sm:$0xff] }
  0x61   :  { %593 = vmatpush1.bf16.msra.mxu1 %v592_v0  ;;  %631 = vmatprep.subr.bf16.mxu0 %v630_v34  ;;  %v375_v0 = vld [vmem:[#allocation6 + $0xc0] sm:$0xff]  ;;  %v652_v22 = vpack.c.bf16 %v366_v21, %v365_v20 }
  0x62   :  { %595 = vmatprep.subr.bf16.mxu1 %v594_v43  ;;  %v376_v43 = vld [vmem:[#allocation6 + $0xc8] sm:$0xff] }
  0x63   :  { %v638_v45 = vpack.c.bf16 %v376_v43, %v375_v0 }
  0x64   :  { %633 = vmatpush3.bf16.msra.mxu0 %v632_v39  ;;  %v485_v39 = vld [vmem:[%s860_s6] ss:$0 sm:$0xff] }
  0x65   :  { %597 = vmatpush1.bf16.msra.mxu1 %v596_v48  ;;  %635 = vmatprep.subr.bf16.mxu0 %v634_v40  ;;  %v377_v48 = vld [vmem:[#allocation6 + $0xd0] sm:$0xff] }
  0x66   :  { %599 = vmatprep.subr.bf16.mxu1 %v598_v49  ;;  %v378_v49 = vld [vmem:[#allocation6 + $0xd8] sm:$0xff] }
  0x67   :  { %v642_v51 = vpack.c.bf16 %v378_v49, %v377_v48 }
  0x68   :  { %637 = vmatpush3.bf16.msra.mxu0 %v636_v44 }
  0x69   :  { %601 = vmatpush1.bf16.msra.mxu1 %v600_v54  ;;  %639 = vmatprep.subr.bf16.mxu0 %v638_v45  ;;  %v379_v54 = vld [vmem:[#allocation6 + $0xe0] sm:$0xff] }
  0x6a   :  { %603 = vmatprep.subr.bf16.mxu1 %v602_v55  ;;  %v380_v55 = vld [vmem:[#allocation6 + $0xe8] sm:$0xff] }
  0x6b   :  { %v646_v57 = vpack.c.bf16 %v380_v55, %v379_v54 }
  0x6c   :  { %641 = vmatpush3.bf16.msra.mxu0 %v640_v50 }
  0x6d   :  { %605 = vmatpush1.bf16.msra.mxu1 %v604_v60  ;;  %643 = vmatprep.subr.bf16.mxu0 %v642_v51  ;;  %v105_v60 = vsub.s32 0, %v104_v59 }
  0x6e   :  { %607 = vmatprep.subr.bf16.mxu1 %v606_v61  ;;  %v101_v61 = vld [vmem:[%s856_s2] sm:$0x3] }
  0x6f   :  { %v106_v63 = vrot.slane %v101_v61, %v105_v60  ;;  %v110_v1 = vrot.slane %v101_v61, %v109_v62  ;;  %v263_v24 = vrot.slane %v258_v23, %v105_v60 }
  0x70   :  { %645 = vmatpush3.bf16.msra.mxu0 %v644_v56 }
  0x71   :  { %609 = vmatpush1.bf16.msra.mxu1 %v608_v3  ;;  %647 = vmatprep.subr.bf16.mxu0 %v646_v57 }
  0x72   :  { %611 = vmatprep.subr.bf16.mxu1 %v610_v4 }
  0x75   :  { %613 = vmatpush1.bf16.msra.mxu1 %v612_v9 }
  0x76   :  { %615 = vmatprep.subr.bf16.mxu1 %v614_v10 }
  0x79   :  { %617 = vmatpush1.bf16.msra.mxu1 %v616_v13 }
  0x7a   :  { %619 = vmatprep.subr.bf16.mxu1 %v618_v16  ;;  %v648_v16 = vpack.c.bf16 %v364_v15, %v363_v14 }
  0x7c   :  { %649 = vmatpush3.bf16.msra.mxu0 %v648_v16 }
  0x7d   :  { %621 = vmatpush1.bf16.msra.mxu1 %v620_v19  ;;  %v650_v19 = vpack.c.bf16 %v382_v18, %v381_v17 }
  0x7f   :  { %651 = vmatprep.subr.bf16.mxu0 %v650_v19 }
  0x80   :  { %653 = vmatpush3.bf16.msra.mxu0 %v652_v22 }
 0x12c   :  { %v179_v2 = vpop.f32.mrb[0].mxu0 }
 0x12d   :  { %v180_v3 = vadd.f32 %v179_v2, %v106_v63  ;;  %v181_v4 = vpop.f32.mrb[1].mxu0 }
 0x12e   :  { %v182_v5 = vadd.f32 %v181_v4, %v110_v1 }
 0x12f   :  { %v190_v8 = vmax.f32 %v180_v3, 0.0 }
 0x130   :  { %v185_v6 = vpop.f32.mrb[2].mxu0  ;;  %v191_v7 = vmax.f32 %v182_v5, 0.0 }
 0x131   :  { %v186_v9 = vadd.f32 %v185_v6, %v106_v63  ;;  %v187_v10 = vpop.f32.mrb[3].mxu0 }
 0x132   :  { %v188_v11 = vadd.f32 %v187_v10, %v110_v1  ;;  %334 = vmatprep.mubr.f32.mxu1 %v191_v7 }
 0x133   :  { %335 = vmatmul.mubr.f32.vlgmr.msra.gmra.mrb[0].mxu1 %v190_v8  ;;  %v192_v13 = vmax.f32 %v186_v9, 0.0 }
 0x134   :  { %v193_v12 = vmax.f32 %v188_v11, 0.0 }
 0x136   :  { %340 = vmatprep.mubr.f32.mxu1 %v193_v12 }
 0x137   :  { %341 = vmatmul.mubr.f32.gmra.mrb[2].mxu1 %v192_v13 }
 0x206   :  { %v336_v26 = vpop.f32.mrb[0].mxu1 }
 0x207   :  { %v337_v27 = vadd.f32 %v336_v26, %v263_v24  ;;  %v338_v28 = vpop.f32.mrb[1].mxu1 }
 0x208   :  { %v339_v29 = vadd.f32 %v338_v28, %v267_v25 }
 0x209   :  { %v347_v32 = vmax.f32 %v337_v27, 0.0 }
 0x20a   :  { %v348_v30 = vmax.f32 %v339_v29, 0.0  ;;  %v342_v31 = vpop.f32.mrb[2].mxu1 }
 0x20b   :  { %v343_v33 = vadd.f32 %v342_v31, %v263_v24  ;;  %v344_v34 = vpop.f32.mrb[3].mxu1 }
 0x20c   :  { %v345_v35 = vadd.f32 %v344_v34, %v267_v25  ;;  %454 = vmatprep.mubr.f32.mxu0 %v348_v30 }
 0x20d   :  { %455 = vmatmul.mubr.f32.vlgmr.msra.gmra.mrb[4].mxu0 %v347_v32  ;;  %v349_v37 = vmax.f32 %v343_v33, 0.0 }
 0x20e   :  { %v350_v36 = vmax.f32 %v345_v35, 0.0 }
 0x210   :  { %459 = vmatprep.mubr.f32.mxu0 %v350_v36 }
 0x211   :  { %460 = vmatmul.mubr.f32.gmra.mrb[6].mxu0 %v349_v37 }
 0x2e0   :  { %v520_v38 = vpop.f32.mrb[4].mxu0 }
 0x2e1   :  { %v521_v40 = vpop.f32.mrb[5].mxu0 }
 0x2e2   :  { %v522_v41 = vadd.f32 %v521_v40, %v520_v38 }
 0x2e4   :  { %v457_v42 = vadd.f32 %v522_v41, %v485_v39  ;;  %v523_v0 = vpop.f32.mrb[6].mxu0 }
 0x2e5   :  { %v524_v43 = vpop.f32.mrb[7].mxu0 }
 0x2e6   :  { %v486_v44 = vmul.f32 -1.442695, %v457_v42  ;;  %v525_v45 = vadd.f32 %v524_v43, %v523_v0 }
 0x2e8   :  { %662 = vpow2.f32 %v486_v44  ;;  %v462_v46 = vadd.f32 %v525_v45, %v485_v39 }
 0x2ea   :  { %v487_v47 = vmul.f32 -1.442695, %v462_v46 }
 0x2ec   :  { %664 = vpow2.f32 %v487_v47 }
 0x2f2   :  { %v663_v48 = vpop.eup %662 }
 0x2f3   :  { %v471_v49 = vadd.f32 1.0, %v663_v48 }
 0x2f5   :  { %666 = vrcp.f32 %v471_v49 }
 0x2f6   :  { %v665_v50 = vpop.eup %664 }
 0x2f7   :  { %v472_v51 = vadd.f32 1.0, %v665_v50 }
 0x2f9   :  { %668 = vrcp.f32 %v472_v51 }
 0x2ff   :  { %v667_v52 = vpop.eup %666 }
 0x300   :  { %477 = vst [vmem:[%s861_s7] sm:$0xff] %v667_v52 }
 0x303   :  { %v669_v53 = vpop.eup %668 }
 0x304   :  { %478 = vst [vmem:[%s861_s7 + $0x8] sm:$0xff] %v669_v53 }
 0x305   :  { %483 = vsyncpa [#allocation3], 1 }
 0x306   :  { %484 = vsyncpa [#allocation5], 1 }

</bundles_post_ra>
